<compile_context>
chip_gen: v6e
topology: v6e:2x2x1
jax: 0.10.0
libtpu: 0.0.40
codegen_flags: <defaults>
</compile_context>

<pallas_src>
import jax
import jax.numpy as jnp
from jax.experimental import pallas as pl
from jax.experimental.pallas import tpu as pltpu


def _round_up(n, m):
    return ((n + m - 1) // m) * m


def _cdiv(a, b):
    return (a + b - 1) // b


def _vmem_capacity_bytes():
    """Per-core VMEM capacity; falls back to the smallest current part (v7x)."""
    try:
        return int(pltpu.get_tpu_info().vmem_capacity_bytes)
    except Exception:
        return 64 << 20


def _choose_tile_b(batch, row_bytes, budget):
    """Largest power-of-two row tile whose per-step working set fits `budget`,
    keeping >= 4 grid steps when the batch allows it (>= 2 steps per TensorCore
    on megacore parts, so the x/out DMA pipeline stays engaged per core)."""
    assert 8 * row_bytes <= budget, (
        f"per-row VMEM footprint {row_bytes} B exceeds VMEM budget {budget} B")
    tile = 8
    for t in (16, 32, 64, 128, 256, 512, 1024, 2048, 4096):
        if t * row_bytes > budget or 4 * t > batch:
            break
        tile = t
    return tile


def _const_specs(shapes):
    """BlockSpecs for grid-constant operands (weights/basis/biases).

    Constant index_map => DMA'd once across the grid.  When the installed
    Pallas supports `pipeline_mode`, single-buffer them so they do not pay for
    an unused second pipeline buffer.  Returns (specs, buffer_factor).
    """
    def idx_map(nd):
        return lambda i: (0,) * nd

    try:
        specs = [pl.BlockSpec(s, idx_map(len(s)), pipeline_mode=pl.Buffered(1))
                 for s in shapes]
        return specs, 1
    except Exception:  # pipeline_mode / Buffered unavailable in this jax
        return [pl.BlockSpec(s, idx_map(len(s))) for s in shapes], 2


def nbeats_block(x, params, *, tile_b=None, compute_dtype=jnp.bfloat16):
    """NBeatsBlock forward (GenericBasis) as one Pallas TPU kernel.

    x: (batch, input_size) float32
    params: dict with w1,b1,w2,b2,w3,b3,w4b,b4b,w4f,b4f,bb,bf (weights are
            (in, out) == torch weight.T).
    Returns (backcast, forecast) in float32.

    compute_dtype=bfloat16 halves HBM/VMEM traffic for matmul operands
    (f32 MXU accumulation, bias+ReLU in f32); expect ~1e-2-level relative error
    vs. a pure f32 forward at large hidden sizes — pass jnp.float32 for
    full-precision math.
    """
    B, input_size = x.shape
    hidden = params["w1"].shape[1]
    coef = params["w4b"].shape[1]
    back_size = params["bb"].shape[1]
    fore_size = params["bf"].shape[1]
    coef2 = 2 * coef

    # Lane-aligned (128-multiple) feature dims.  theta and the output slab are
    # packed tightly *before* rounding so small coef / output sizes do not
    # double the padded width.
    hid_p = _round_up(hidden, 128)
    coef2_p = _round_up(coef2, 128)
    out_p = _round_up(back_size + fore_size, 128)
    bias_w = max(hid_p, coef2_p)

    cdt = jnp.dtype(compute_dtype)

    def pad2(a, rows, cols):
        return jnp.pad(a, ((0, rows - a.shape[0]), (0, cols - a.shape[1])))

    # --- pack weight operands (tiny one-time pads/concats, fused by XLA) -----
    w1 = pad2(params["w1"], input_size, hid_p).astype(cdt)   # K kept natural
    w2 = pad2(params["w2"], hid_p, hid_p).astype(cdt)
    w3 = pad2(params["w3"], hid_p, hid_p).astype(cdt)
    # Last Linear == theta then chunk(2, dim=1): [theta_b | theta_f] fused.
    w4 = pad2(jnp.concatenate([params["w4b"], params["w4f"]], axis=1),
              hid_p, coef2_p).astype(cdt)
    # Block-diagonal basis: theta @ basis -> tightly packed [backcast|forecast].
    basis = jnp.zeros((coef2_p, out_p), cdt)
    basis = basis.at[:coef, :back_size].set(params["bb"].astype(cdt))
    basis = basis.at[coef:coef2, back_size:back_size + fore_size].set(
        params["bf"].astype(cdt))
    # Four bias rows packed into one f32 operand (bias add / ReLU stay in f32).
    biases = jnp.zeros((4, bias_w), jnp.float32)
    biases = biases.at[0, :hidden].set(params["b1"].reshape(-1))
    biases = biases.at[1, :hidden].set(params["b2"].reshape(-1))
    biases = biases.at[2, :hidden].set(params["b3"].reshape(-1))
    biases = biases.at[3, :coef].set(params["b4b"].reshape(-1))
    biases = biases.at[3, coef:coef2].set(params["b4f"].reshape(-1))

    weights = (w1, w2, w3, w4, basis, biases)
    const_specs, wbuf = _const_specs(tuple(w.shape for w in weights))

    def nbytes(a):
        return a.size * a.dtype.itemsize

    weight_bytes = wbuf * sum(nbytes(w) for w in weights)
    # Per batch-row VMEM: double-buffered f32 x tile + its compute-dtype cast,
    # live f32 activations (+ one compute-dtype copy), double-buffered f32 out.
    row_bytes = (2 * input_size * 4 + input_size * cdt.itemsize
                 + (hid_p + coef2_p) * 4 + hid_p * cdt.itemsize
                 + 2 * out_p * 4)

    vmem_cap = _vmem_capacity_bytes()
    if tile_b is None:
        # ~28 MiB working budget on 128-MiB-VMEM parts (v5e/v6e),
        # ~16 MiB per core on 64-MiB v7x.
        budget = max(min(vmem_cap // 4, 28 << 20) - weight_bytes, 1 << 20)
        tile_b = _choose_tile_b(B, row_bytes, budget)
    else:
        assert tile_b % 8 == 0, "tile_b must be a multiple of 8 (sublane tiling)"

    steps = _cdiv(B, tile_b)
    if steps >= 4 and steps % 2:
        steps += 1          # even split across the two TensorCores on v7x
    Bp = steps * tile_b
    # Only batch rows are ever padded in HBM (f32); feature dim stays natural
    # and the compute-dtype cast happens inside the kernel.
    x_in = x if Bp == B else jnp.pad(x, ((0, Bp - B), (0, 0)))

    def kernel(x_ref, w1_ref, w2_ref, w3_ref, w4_ref, basis_ref, bias_ref,
               out_ref):
        cd = w1_ref.dtype
        xv = x_ref[...].astype(cd)          # f32 -> compute dtype, in VMEM
        # fc: (Linear -> ReLU) x3 -> Linear, f32 MXU accumulation throughout.
        h = jnp.dot(xv, w1_ref[...], preferred_element_type=jnp.float32)
        h = jnp.maximum(h + bias_ref[0:1, :hid_p], 0.0).astype(cd)
        h = jnp.dot(h, w2_ref[...], preferred_element_type=jnp.float32)
        h = jnp.maximum(h + bias_ref[1:2, :hid_p], 0.0).astype(cd)
        h = jnp.dot(h, w3_ref[...], preferred_element_type=jnp.float32)
        h = jnp.maximum(h + bias_ref[2:3, :hid_p], 0.0).astype(cd)
        # theta = [theta_b | theta_f] in one matmul (tightly packed columns).
        theta = jnp.dot(h, w4_ref[...], preferred_element_type=jnp.float32)
        theta = (theta + bias_ref[3:4, :coef2_p]).astype(cd)
        # Block-diagonal basis -> single lane-dense [backcast | forecast] slab.
        out_ref[...] = jnp.dot(
            theta, basis_ref[...], preferred_element_type=jnp.float32
        ).astype(out_ref.dtype)

    in_specs = [pl.BlockSpec((tile_b, input_size), lambda i: (i, 0))] + const_specs
    out_specs = pl.BlockSpec((tile_b, out_p), lambda i: (i, 0))
    out_shape = jax.ShapeDtypeStruct((Bp, out_p), jnp.float32)

    flops = 2 * Bp * (input_size * hid_p + 2 * hid_p * hid_p
                      + hid_p * coef2_p + coef2_p * out_p)
    bytes_accessed = (nbytes(x_in) + sum(nbytes(w) for w in weights)
                      + Bp * out_p * 4)
    cost = pl.CostEstimate(flops=flops, transcendentals=0,
                           bytes_accessed=bytes_accessed)

    step_bytes = weight_bytes + tile_b * row_bytes
    # Always set the scoped-VMEM limit (v5e default is only 16 MiB); never ask
    # for more than 3/4 of the per-core capacity (64 MiB on v7x).
    vmem_limit = int(min(max(step_bytes + (4 << 20), 32 << 20),
                         (3 * vmem_cap) // 4))

    out = pl.pallas_call(
        kernel,
        grid=(steps,),
        in_specs=in_specs,
        out_specs=out_specs,
        out_shape=out_shape,
        cost_estimate=cost,
        compiler_params=pltpu.CompilerParams(
            dimension_semantics=("parallel",),  # megacore shards the batch grid
            vmem_limit_bytes=vmem_limit,
        ),
    )(x_in, *weights)

    backcast = out[:B, :back_size]
    forecast = out[:B, back_size:back_size + fore_size]
    return backcast, forecast


def init_params(key, input_size, hidden_size, coef_size, forecast_size):
    ks = jax.random.split(key, 10)
    scale = 0.05

    def w(k, shape):
        return (scale * jax.random.normal(k, shape)).astype(jnp.float32)

    # Last Linear maps hidden -> 2*coef_size; split into backcast/forecast halves.
    w4 = w(ks[3], (hidden_size, 2 * coef_size))
    b4 = w(ks[7], (1, 2 * coef_size))
    return {
        "w1": w(ks[0], (input_size, hidden_size)),
        "b1": w(ks[4], (1, hidden_size)),
        "w2": w(ks[1], (hidden_size, hidden_size)),
        "b2": w(ks[5], (1, hidden_size)),
        "w3": w(ks[2], (hidden_size, hidden_size)),
        "b3": w(ks[6], (1, hidden_size)),
        "w4b": w4[:, :coef_size],
        "b4b": b4[:, :coef_size],
        "w4f": w4[:, coef_size:],
        "b4f": b4[:, coef_size:],
        # GenericBasis projection matrices
        "bb": w(ks[8], (coef_size, input_size)),      # backcast basis
        "bf": w(ks[9], (coef_size, forecast_size)),   # forecast basis
    }


def reference(x, p, compute_dtype=jnp.bfloat16):
    """Pure-JAX reference mirroring the PyTorch forward with the same operand
    precision as the kernel (compute-dtype matmul operands, f32 accumulation)."""
    cd = jnp.dtype(compute_dtype)

    def dot(a, b):
        return jnp.dot(a.astype(cd), b.astype(cd),
                       preferred_element_type=jnp.float32)

    h = jax.nn.relu(dot(x, p["w1"]) + p["b1"])
    h = jax.nn.relu(dot(h, p["w2"]) + p["b2"])
    h = jax.nn.relu(dot(h, p["w3"]) + p["b3"])
    theta_b = dot(h, p["w4b"]) + p["b4b"]
    theta_f = dot(h, p["w4f"]) + p["b4f"]
    return dot(theta_b, p["bb"]), dot(theta_f, p["bf"])


if __name__ == "__main__":
    batch = 256          # gives a 4-step grid (2 steps per core on megacore)
    input_size = 32      # backcast length
    hidden_size = 64
    coef_size = 16
    forecast_size = 8

    key = jax.random.PRNGKey(0)
    kx, kp = jax.random.split(key)
    x = jax.random.normal(kx, (batch, input_size), dtype=jnp.float32)
    params = init_params(kp, input_size, hidden_size, coef_size, forecast_size)

    backcast, forecast = nbeats_block(x, params)
    jax.block_until_ready((backcast, forecast))

    ref_back, ref_fore = reference(x, params)
    assert backcast.shape == (batch, input_size)
    assert forecast.shape == (batch, forecast_size)
    assert jnp.allclose(backcast, ref_back, atol=1e-4, rtol=1e-3), float(
        jnp.max(jnp.abs(backcast - ref_back)))
    assert jnp.allclose(forecast, ref_fore, atol=1e-4, rtol=1e-3), float(
        jnp.max(jnp.abs(forecast - ref_fore)))

    print("KERNEL_OK")
</pallas_src>

<mosaic_0001>
module attributes {stable_mosaic.version = 11 : i64} {
  func.func @kernel(%arg0: i32, %arg1: memref<64x32xf32, #tpu.memory_space<vmem>>, %arg2: memref<32x128xbf16, #tpu.memory_space<vmem>>, %arg3: memref<128x128xbf16, #tpu.memory_space<vmem>>, %arg4: memref<128x128xbf16, #tpu.memory_space<vmem>>, %arg5: memref<128x128xbf16, #tpu.memory_space<vmem>>, %arg6: memref<128x128xbf16, #tpu.memory_space<vmem>>, %arg7: memref<4x128xf32, #tpu.memory_space<vmem>>, %arg8: memref<64x128xf32, #tpu.memory_space<vmem>>) attributes {dimension_semantics = [#tpu.dimension_semantics<parallel>], iteration_bounds = array<i64: 4>, scalar_prefetch = 0 : i64, scratch_operands = 0 : i64, tpu.core_type = #tpu.core_type<tc>, window_params = [{transform_indices = @transform_0, window_bounds = array<i64: 64, 32>}, {pipeline_mode = #tpu.pipeline_mode<synchronous>, transform_indices = @transform_1, window_bounds = array<i64: 32, 128>}, {pipeline_mode = #tpu.pipeline_mode<synchronous>, transform_indices = @transform_2, window_bounds = array<i64: 128, 128>}, {pipeline_mode = #tpu.pipeline_mode<synchronous>, transform_indices = @transform_3, window_bounds = array<i64: 128, 128>}, {pipeline_mode = #tpu.pipeline_mode<synchronous>, transform_indices = @transform_4, window_bounds = array<i64: 128, 128>}, {pipeline_mode = #tpu.pipeline_mode<synchronous>, transform_indices = @transform_5, window_bounds = array<i64: 128, 128>}, {pipeline_mode = #tpu.pipeline_mode<synchronous>, transform_indices = @transform_6, window_bounds = array<i64: 4, 128>}, {transform_indices = @transform_7, window_bounds = array<i64: 64, 128>}]} {
    %c0 = arith.constant 0 : index
    %c0_0 = arith.constant 0 : index
    %0 = vector.load %arg1[%c0, %c0_0] : memref<64x32xf32, #tpu.memory_space<vmem>>, vector<64x32xf32>
    %1 = arith.truncf %0 : vector<64x32xf32> to vector<64x32xbf16>
    %c0_1 = arith.constant 0 : index
    %c0_2 = arith.constant 0 : index
    %2 = vector.load %arg2[%c0_1, %c0_2] : memref<32x128xbf16, #tpu.memory_space<vmem>>, vector<32x128xbf16>
    %cst = arith.constant dense<0.000000e+00> : vector<64x128xf32>
    %3 = tpu.matmul %1, %2, %cst {dimension_numbers = #tpu.dot_dimension_numbers<[1], [0], [0], [1], [0, 0, 1, 1], [], []>} : vector<64x32xbf16>, vector<32x128xbf16>, vector<64x128xf32> -> vector<64x128xf32>
    %c0_3 = arith.constant 0 : index
    %c0_4 = arith.constant 0 : index
    %4 = vector.load %arg7[%c0_3, %c0_4] : memref<4x128xf32, #tpu.memory_space<vmem>>, vector<1x128xf32>
    %5 = vector.broadcast %4 : vector<1x128xf32> to vector<64x128xf32>
    %6 = arith.addf %3, %5 : vector<64x128xf32>
    %cst_5 = arith.constant 0.000000e+00 : f32
    %7 = vector.broadcast %cst_5 : f32 to vector<64x128xf32>
    %8 = arith.maximumf %6, %7 : vector<64x128xf32>
    %9 = arith.truncf %8 : vector<64x128xf32> to vector<64x128xbf16>
    %c0_6 = arith.constant 0 : index
    %c0_7 = arith.constant 0 : index
    %10 = vector.load %arg3[%c0_6, %c0_7] : memref<128x128xbf16, #tpu.memory_space<vmem>>, vector<128x128xbf16>
    %cst_8 = arith.constant dense<0.000000e+00> : vector<64x128xf32>
    %11 = tpu.matmul %9, %10, %cst_8 {dimension_numbers = #tpu.dot_dimension_numbers<[1], [0], [0], [1], [0, 0, 1, 1], [], []>} : vector<64x128xbf16>, vector<128x128xbf16>, vector<64x128xf32> -> vector<64x128xf32>
    %c1 = arith.constant 1 : index
    %c0_9 = arith.constant 0 : index
    %12 = vector.load %arg7[%c1, %c0_9] : memref<4x128xf32, #tpu.memory_space<vmem>>, vector<1x128xf32>
    %13 = vector.broadcast %12 : vector<1x128xf32> to vector<64x128xf32>
    %14 = arith.addf %11, %13 : vector<64x128xf32>
    %cst_10 = arith.constant 0.000000e+00 : f32
    %15 = vector.broadcast %cst_10 : f32 to vector<64x128xf32>
    %16 = arith.maximumf %14, %15 : vector<64x128xf32>
    %17 = arith.truncf %16 : vector<64x128xf32> to vector<64x128xbf16>
    %c0_11 = arith.constant 0 : index
    %c0_12 = arith.constant 0 : index
    %18 = vector.load %arg4[%c0_11, %c0_12] : memref<128x128xbf16, #tpu.memory_space<vmem>>, vector<128x128xbf16>
    %cst_13 = arith.constant dense<0.000000e+00> : vector<64x128xf32>
    %19 = tpu.matmul %17, %18, %cst_13 {dimension_numbers = #tpu.dot_dimension_numbers<[1], [0], [0], [1], [0, 0, 1, 1], [], []>} : vector<64x128xbf16>, vector<128x128xbf16>, vector<64x128xf32> -> vector<64x128xf32>
    %c2 = arith.constant 2 : index
    %c0_14 = arith.constant 0 : index
    %20 = vector.load %arg7[%c2, %c0_14] : memref<4x128xf32, #tpu.memory_space<vmem>>, vector<1x128xf32>
    %21 = vector.broadcast %20 : vector<1x128xf32> to vector<64x128xf32>
    %22 = arith.addf %19, %21 : vector<64x128xf32>
    %cst_15 = arith.constant 0.000000e+00 : f32
    %23 = vector.broadcast %cst_15 : f32 to vector<64x128xf32>
    %24 = arith.maximumf %22, %23 : vector<64x128xf32>
    %25 = arith.truncf %24 : vector<64x128xf32> to vector<64x128xbf16>
    %c0_16 = arith.constant 0 : index
    %c0_17 = arith.constant 0 : index
    %26 = vector.load %arg5[%c0_16, %c0_17] : memref<128x128xbf16, #tpu.memory_space<vmem>>, vector<128x128xbf16>
    %cst_18 = arith.constant dense<0.000000e+00> : vector<64x128xf32>
    %27 = tpu.matmul %25, %26, %cst_18 {dimension_numbers = #tpu.dot_dimension_numbers<[1], [0], [0], [1], [0, 0, 1, 1], [], []>} : vector<64x128xbf16>, vector<128x128xbf16>, vector<64x128xf32> -> vector<64x128xf32>
    %c3 = arith.constant 3 : index
    %c0_19 = arith.constant 0 : index
    %28 = vector.load %arg7[%c3, %c0_19] : memref<4x128xf32, #tpu.memory_space<vmem>>, vector<1x128xf32>
    %29 = vector.broadcast %28 : vector<1x128xf32> to vector<64x128xf32>
    %30 = arith.addf %27, %29 : vector<64x128xf32>
    %31 = arith.truncf %30 : vector<64x128xf32> to vector<64x128xbf16>
    %c0_20 = arith.constant 0 : index
    %c0_21 = arith.constant 0 : index
    %32 = vector.load %arg6[%c0_20, %c0_21] : memref<128x128xbf16, #tpu.memory_space<vmem>>, vector<128x128xbf16>
    %cst_22 = arith.constant dense<0.000000e+00> : vector<64x128xf32>
    %33 = tpu.matmul %31, %32, %cst_22 {dimension_numbers = #tpu.dot_dimension_numbers<[1], [0], [0], [1], [0, 0, 1, 1], [], []>} : vector<64x128xbf16>, vector<128x128xbf16>, vector<64x128xf32> -> vector<64x128xf32>
    %c0_23 = arith.constant 0 : index
    %c0_24 = arith.constant 0 : index
    %34 = vector.load %arg8[%c0_23, %c0_24] : memref<64x128xf32, #tpu.memory_space<vmem>>, vector<64x128xf32>
    tpu.vector_store %arg8[%c0_23, %c0_24], %33 {strides = array<i32>} : memref<64x128xf32, #tpu.memory_space<vmem>>, vector<64x128xf32>,
    return
  }
  func.func @transform_0(%arg0: i32) -> (i32, i32) {
    %c0_i32 = arith.constant 0 : i32
    %c0_i32_0 = arith.constant 0 : i32
    return %arg0, %c0_i32 : i32, i32
  }
  func.func @transform_1(%arg0: i32) -> (i32, i32) {
    %c0_i32 = arith.constant 0 : i32
    %c0_i32_0 = arith.constant 0 : i32
    %c0_i32_1 = arith.constant 0 : i32
    return %c0_i32, %c0_i32_0 : i32, i32
  }
  func.func @transform_2(%arg0: i32) -> (i32, i32) {
    %c0_i32 = arith.constant 0 : i32
    %c0_i32_0 = arith.constant 0 : i32
    %c0_i32_1 = arith.constant 0 : i32
    return %c0_i32, %c0_i32_0 : i32, i32
  }
  func.func @transform_3(%arg0: i32) -> (i32, i32) {
    %c0_i32 = arith.constant 0 : i32
    %c0_i32_0 = arith.constant 0 : i32
    %c0_i32_1 = arith.constant 0 : i32
    return %c0_i32, %c0_i32_0 : i32, i32
  }
  func.func @transform_4(%arg0: i32) -> (i32, i32) {
    %c0_i32 = arith.constant 0 : i32
    %c0_i32_0 = arith.constant 0 : i32
    %c0_i32_1 = arith.constant 0 : i32
    return %c0_i32, %c0_i32_0 : i32, i32
  }
  func.func @transform_5(%arg0: i32) -> (i32, i32) {
    %c0_i32 = arith.constant 0 : i32
    %c0_i32_0 = arith.constant 0 : i32
    %c0_i32_1 = arith.constant 0 : i32
    return %c0_i32, %c0_i32_0 : i32, i32
  }
  func.func @transform_6(%arg0: i32) -> (i32, i32) {
    %c0_i32 = arith.constant 0 : i32
    %c0_i32_0 = arith.constant 0 : i32
    %c0_i32_1 = arith.constant 0 : i32
    return %c0_i32, %c0_i32_0 : i32, i32
  }
  func.func @transform_7(%arg0: i32) -> (i32, i32) {
    %c0_i32 = arith.constant 0 : i32
    %c0_i32_0 = arith.constant 0 : i32
    return %arg0, %c0_i32 : i32, i32
  }
}

</mosaic_0001>

<bundles_post_ra>
// kernel: tpu_custom_call.1
= control target key start
LH: loop header
LB: loop body
LE: loop exit
PB: predicated region body
PF: predicated region fallthrough
CT: control target
= control target key end

     0   :  { %12 = vsyncpa [#allocation3], 0  ;;  %s1663_s0 = inlined_call_operand.vmem [shape: f32[256,32], index: 0, kind: input, shape index: {}]   ;;  %s1664_s1 = inlined_call_operand.vmem [shape: bf16[32,128], index: 1, kind: input, shape index: {}]   ;;  %s1665_s2 = inlined_call_operand.vmem [shape: bf16[128,128], index: 2, kind: input, shape index: {}]   ;;  %s1666_s3 = inlined_call_operand.vmem [shape: bf16[128,128], index: 3, kind: input, shape index: {}]   ;;  %s1667_s4 = inlined_call_operand.vmem [shape: bf16[128,128], index: 4, kind: input, shape index: {}]   ;;  %s1668_s5 = inlined_call_operand.vmem [shape: bf16[128,128], index: 5, kind: input, shape index: {}]   ;;  %s1669_s6 = inlined_call_operand.vmem [shape: f32[4,128], index: 6, kind: input, shape index: {}]   ;;  %s1670_s7 = inlined_call_operand.hbm [shape: f32[256,128], index: 7, kind: output, shape index: {}]  }
   0x1   :  { %14 = vsyncpa [#allocation3 + $0x1], 0  ;;  %s1444_s24 = smov 0   ;;  %s1446_s25 = smov 0  }
   0x2   :  { %s1448_s26 = smov 0   ;;  %s1450_s27 = smov 0  }
   0x3 LB: > { %s1465_s28 = sadd.s32 4294967295, %s1399_s27   ;;  %s1047_s29 = sadd.s32 4294967294, %s1399_s27   ;;  %s1399_s27 = sphi %s1450_s27, %s1676_s27   ;;  %s1395_s26 = sphi %s1448_s26, %s1675_s26   ;;  %s1391_s25 = sphi %s1446_s25, %s1674_s25   ;;  %s1387_s24 = sphi %s1444_s24, %s1673_s24  }
   0x4   : > { %s1469_s30 = sadd.s32 1, %s1399_s27   ;;  %s179_s8 = sadd.s32 1, %s1395_s26 }
   0x5   : > { %s176_s9 = ssub.s32 %s1399_s27, %s1469_s30  ;;  %p189_p0 = scmp.ne.s32.totalorder %s1395_s26, %s1391_s25 }
   0x6   : > { %p177_p1 = scmp.eq.s32.totalorder %s176_s9, 0  ;;  %p190_p2 = scmp.eq.s32.totalorder %s1465_s28, 3 }
   0x7   : > { %p195_p3 = scmp.ne.s32.totalorder %s1391_s25, %s1387_s24  ;;  %p196_p4 = scmp.eq.s32.totalorder %s1047_s29, 3 }
   0x8   : > { %s1480_s10 = scalar_select %p177_p1, %s1395_s26, %s179_s8  }
   0x9   : > { %p1482_p5 = por %p190_p2, %p189_p0  ;;  %p1486_p6 = por %p196_p4, %p195_p3 }
   0xa   : > { %p1050_p7 = scmp.ge.s32.totalorder %s1399_s27, 1  ;;  %p241_p8 = scmp.lt.s32.totalorder %s1399_s27, 5 }
   0xc   : > { %p242_p9 = pnand %p1050_p7, %p241_p8 }
   0xd   : > { %s1052_s15 = sshll.u32 (!%p242_p9), %s1465_s28, 3  ;;  %s270_s29 = sand.u32 (!%p242_p9), 1, %s1391_s25  }
   0xe   : > { %245 = sbr.rel (%p242_p9) target bundleno = 1071 (0x42f), region = 48  ;;  %p274_p10 = scmp.lt.s32.totalorder (!%p242_p9), %s1052_s15, 31 }
   0xf   : > { %s1101_s14 = sshll.u32 (!%p242_p9), %s1465_s28, 10  ;;  %s1623_s18 = scalar_lea.sflag (!%p242_p9), [#allocation3], %s270_s29 }
  0x10   : > { %s1621_s17 = scalar_lea.hbm (!%p242_p9), %s1670_s7, %s1101_s14  ;;  %s1401_s28 = smov (!%p242_p9), [#allocation2]  }
  0x11   : > { %s1343_s20 = sshll.u32 (!%p242_p9), %s1401_s28, 4  ;;  %s1344_s20 = int_to_ptr.vmem [resolvable:$false] %s1343_s20 }
  0x12   : > { %s1345_s21 = scalar_lea.vmem (!%p242_p9), %s1344_s20, 2048 }
  0x13   : > { %v1305_v0 = vld [vmem:[%s1664_s1 + $0x8] sm:$0xff]   ;;  %v1306_v1 = vld [vmem:[%s1664_s1] sm:$0xff]   ;;  %v1307_v2 = vld [vmem:[%s1665_s2 + $0x38] sm:$0xff]   ;;  %s1678_s15 = smov (!%p274_p10, %s1052_s15), 31  ;;  %vm314_vm0 = vcmask 261120  }
  0x14   : > { %1156 = vmatprep.subr.bf16.mxu0 %v1305_v0  ;;  %v1308_v3 = vld [vmem:[%s1665_s2 + $0x30] sm:$0xff]   ;;  %1168 = vmatprep.subr.bf16.mxu1 %v1307_v2  ;;  %s1053_s22 = sshll.u32 %s1678_s15, 3  ;;  %v1309_v4 = vld [vmem:[%s1665_s2 + $0x28] sm:$0xff]   ;;  %v1310_v14 = vld [vmem:[%s1665_s2 + $0x20] sm:$0xff]  }
  0x15   : > { %1157 = vmatpush3.bf16.msra.mxu0 %v1305_v0  ;;  %1169 = vmatpush3.bf16.msra.mxu1 %v1307_v2  ;;  %s277_s8 = scalar_lea.vmem %s1663_s0, %s1053_s22  ;;  %v1311_v17 = vld [vmem:[%s1665_s2 + $0x18] sm:$0xff]   ;;  %v1312_v19 = vld [vmem:[%s1665_s2 + $0x10] sm:$0xff]   ;;  %v1313_v20 = vld [vmem:[%s1665_s2 + $0x8] sm:$0xff]  }
  0x16   : > { %1158 = vmatprep.subr.bf16.mxu0 %v1306_v1  ;;  %1170 = vmatprep.subr.bf16.mxu1 %v1308_v3  ;;  %v281_v5 = vld [vmem:[%s277_s8] sm:$0xff]  ;;  %v282_v6 = vld [vmem:[%s277_s8 + $0x8] sm:$0xff]  ;;  %v283_v7 = vld [vmem:[%s277_s8 + $0x10] sm:$0xff] }
  0x17   : > { %v289_v8 = vpack.c.bf16 %v282_v6, %v281_v5  ;;  %v284_v9 = vld [vmem:[%s277_s8 + $0x18] sm:$0xff]  ;;  %v285_v10 = vld [vmem:[%s277_s8 + $0x20] sm:$0xff]  ;;  %v286_v11 = vld [vmem:[%s277_s8 + $0x28] sm:$0xff] }
  0x18   : > { %v290_v12 = vpack.c.bf16 %v284_v9, %v283_v7  ;;  %v291_v13 = vpack.c.bf16 %v286_v11, %v285_v10  ;;  %v287_v15 = vld [vmem:[%s277_s8 + $0x30] sm:$0xff]  ;;  %v288_v16 = vld [vmem:[%s277_s8 + $0x38] sm:$0xff]  ;;  %v1314_v21 = vld [vmem:[%s1665_s2] sm:$0xff]   ;;  %s1051_s8 = sshll.u32 %s270_s29, 6 }
  0x19   : > { %1159 = vmatpush3.bf16.msra.mxu0 %v1306_v1  ;;  %1171 = vmatpush3.bf16.msra.mxu1 %v1308_v3  ;;  %v292_v18 = vpack.c.bf16 %v288_v16, %v287_v15  ;;  %v1315_v22 = vld [vmem:[%s1666_s3 + $0x38] sm:$0xff]   ;;  %v1316_v23 = vld [vmem:[%s1666_s3 + $0x30] sm:$0xff]   ;;  %v1317_v24 = vld [vmem:[%s1666_s3 + $0x28] sm:$0xff]   ;;  %s272_s9 = scalar_lea.vmem [#allocation2], %s1051_s8 }
  0x1a   : > { %1160 = vmatprep.mubr.msk.bf16.mxu0 %vm314_vm0, %v289_v8  ;;  %1172 = vmatprep.subr.bf16.mxu1 %v1309_v4  ;;  %v1318_v25 = vld [vmem:[%s1666_s3 + $0x20] sm:$0xff]   ;;  %v1319_v26 = vld [vmem:[%s1666_s3 + $0x18] sm:$0xff]   ;;  %v1320_v56 = vld [vmem:[%s1666_s3 + $0x10] sm:$0xff]   ;;  %s985_s13 = sshll.u32 %s272_s9, 4  ;;  %s1616_s13 = int_to_ptr.vmem [resolvable:$true] %s985_s13 }
  0x1b   : > { %1192 = vmatprep.subr.bf16.mxu0 %v1315_v22  ;;  %v1054_v29 = vld [vmem:[%s1669_s6] ss:$0 sm:$0xff]  ;;  %v1321_v57 = vld [vmem:[%s1666_s3 + $0x8] sm:$0xff]   ;;  %v1323_v59 = vld [vmem:[%s1667_s4 + $0x38] sm:$0xff]   ;;  %s1339_s19 = scalar_lea.vmem %s1616_s13, 1024  ;;  %p1346_p0 = scmp.lt.s32.totalorder %s1616_s13, %s1344_s20 }
  0x1c   : > { %1161 = vmatmul.mubr.msk.bf16.vlgmr.msra.gmra.mxu0 %vm314_vm0, %v290_v12  ;;  %v1322_v58 = vld [vmem:[%s1666_s3] sm:$0xff]   ;;  %v1324_v60 = vld [vmem:[%s1667_s4 + $0x30] sm:$0xff]   ;;  %v1325_v61 = vld [vmem:[%s1667_s4 + $0x28] sm:$0xff]   ;;  %p1340_p11 = scmp.ne.s32.totalorder %s1616_s13, %s1339_s19  ;;  %p1347_p1 = scmp.lt.s32.totalorder %s1345_s21, %s1339_s19 }
  0x1d   : > { %1164 = vmatprep.mubr.msk.bf16.mxu0 %vm314_vm0, %v291_v13  ;;  %1173 = vmatpush3.bf16.msra.mxu1 %v1309_v4  ;;  %v1326_v62 = vld [vmem:[%s1667_s4 + $0x20] sm:$0xff]   ;;  %v1327_v63 = vld [vmem:[%s1667_s4 + $0x18] sm:$0xff]  }
  0x1e   : > { %1174 = vmatprep.subr.bf16.mxu1 %v1310_v14  ;;  %1193 = vmatpush3.bf16.msra.mxu0 %v1315_v22  ;;  %v1061_v2 = vld [vmem:[%s1669_s6 + $0x1] ss:$0 sm:$0xff]  ;;  %p1341_p12 = pnand %p1340_p11, %p1482_p5  ;;  %p1348_p2 = por %p1347_p1, %p1346_p0 }
  0x1f   : > { %1194 = vmatprep.subr.bf16.mxu0 %v1316_v23 }
  0x20   : > { %p1342_p13 = pneg %p1341_p12 }
  0x21   : > { %1175 = vmatpush3.bf16.msra.mxu1 %v1310_v14 }
  0x22   : > { %1176 = vmatprep.subr.bf16.mxu1 %v1311_v17  ;;  %1195 = vmatpush3.bf16.msra.mxu0 %v1316_v23  ;;  %p1349_p3 = pnand %p1348_p2, %p1342_p13 }
  0x23   : > { %1196 = vmatprep.subr.bf16.mxu0 %v1317_v24 }
  0x24   : > { %1165 = vmatmul.mubr.msk.bf16.gmra.mxu0 %vm314_vm0, %v292_v18 }
  0x25   : > { %1177 = vmatpush3.bf16.msra.mxu1 %v1311_v17 }
  0x26   : > { %1178 = vmatprep.subr.bf16.mxu1 %v1312_v19  ;;  %1197 = vmatpush3.bf16.msra.mxu0 %v1317_v24 }
  0x27   : > { %1198 = vmatprep.subr.bf16.mxu0 %v1318_v25 }
  0x29   : > { %1179 = vmatpush3.bf16.msra.mxu1 %v1312_v19 }
  0x2a   : > { %1180 = vmatprep.subr.bf16.mxu1 %v1313_v20  ;;  %1199 = vmatpush3.bf16.msra.mxu0 %v1318_v25 }
  0x2b   : > { %1200 = vmatprep.subr.bf16.mxu0 %v1319_v26 }
  0x2d   : > { %1181 = vmatpush3.bf16.msra.mxu1 %v1313_v20 }
  0x2e   : > { %1182 = vmatprep.subr.bf16.mxu1 %v1314_v21  ;;  %1201 = vmatpush3.bf16.msra.mxu0 %v1319_v26 }
  0x2f   : > { %1202 = vmatprep.subr.bf16.mxu0 %v1320_v56 }
  0x31   : > { %1183 = vmatpush3.bf16.msra.mxu1 %v1314_v21 }
  0x32   : > { %1203 = vmatpush3.bf16.msra.mxu0 %v1320_v56  ;;  %1216 = vmatprep.subr.bf16.mxu1 %v1323_v59 }
  0x33   : > { %1204 = vmatprep.subr.bf16.mxu0 %v1321_v57 }
  0x36   : > { %1205 = vmatpush3.bf16.msra.mxu0 %v1321_v57 }
  0x37   : > { %1206 = vmatprep.subr.bf16.mxu0 %v1322_v58 }
  0x3a   : > { %1207 = vmatpush3.bf16.msra.mxu0 %v1322_v58 }
  0xdc   : > { %v1162_v27 = vpop.f32.mrf.mxu0 }
  0xdd   : > { %v370_v33 = vadd.f32 %v1162_v27, %v1054_v29 }
  0xde   : > { %v361_v28 = vpop.f32.mrf.mxu0 }
  0xdf   : > { %v362_v31 = vadd.f32 %v1054_v29, %v361_v28  ;;  %v394_v40 = vmax.f32 %v370_v33, 0.0  ;;  %v1332_v33 = vld [vmem:[%s1668_s5 + $0x30] sm:$0xff]  }
  0xe0   : > { %v1163_v30 = vpop.f32.mrf.mxu0 }
  0xe1   : > { %v373_v32 = vadd.f32 %v1163_v30, %v1054_v29  ;;  %v392_v38 = vmax.f32 %v362_v31, 0.0  ;;  %v1329_v30 = vld [vmem:[%s1667_s4 + $0x8] sm:$0xff]   ;;  %v1330_v31 = vld [vmem:[%s1667_s4] sm:$0xff]  }
  0xe2   : > { %v364_v34 = vpop.f32.mrf.mxu0 }
  0xe3   : > { %v365_v35 = vadd.f32 %v1054_v29, %v364_v34  ;;  %v395_v36 = vmax.f32 %v373_v32, 0.0  ;;  %v1331_v32 = vld [vmem:[%s1668_s5 + $0x38] sm:$0xff]   ;;  %v1333_v34 = vld [vmem:[%s1668_s5 + $0x28] sm:$0xff]  }
  0xe4   : > { %v1166_v37 = vpop.f32.mrf.mxu0  ;;  %1240 = vmatprep.subr.bf16.mxu0 %v1331_v32 }
  0xe5   : > { %v393_v39 = vmax.f32 %v365_v35, 0.0  ;;  %v401_v43 = vpack.c.bf16 %v395_v36, %v394_v40  ;;  %v386_v47 = vadd.f32 %v1166_v37, %v1054_v29  ;;  %v1334_v35 = vld [vmem:[%s1668_s5 + $0x20] sm:$0xff]   ;;  %v1335_v36 = vld [vmem:[%s1668_s5 + $0x18] sm:$0xff]  }
  0xe6   : > { %v377_v41 = vpop.f32.mrf.mxu0 }
  0xe7   : > { %v400_v42 = vpack.c.bf16 %v393_v39, %v392_v38  ;;  %v378_v45 = vadd.f32 %v1054_v29, %v377_v41  ;;  %v398_v53 = vmax.f32 %v386_v47, 0.0  ;;  %v1070_v39 = vld [vmem:[%s1669_s6 + $0x2] ss:$0 sm:$0xff] }
  0xe8   : > { %v1167_v44 = vpop.f32.mrf.mxu0 }
  0xe9   : > { %v389_v46 = vadd.f32 %v1167_v44, %v1054_v29  ;;  %1184 = vmatprep.mubr.bf16.mxu1 %v400_v42  ;;  %v396_v51 = vmax.f32 %v378_v45, 0.0 }
  0xea   : > { %v380_v48 = vpop.f32.mrf.mxu0  ;;  %1185 = vmatmul.mubr.bf16.vlgmr.msra.gmra.mxu1 %v401_v43 }
  0xeb   : > { %v381_v49 = vadd.f32 %v1054_v29, %v380_v48  ;;  %v399_v50 = vmax.f32 %v389_v46, 0.0  ;;  %1217 = vmatpush3.bf16.msra.mxu1 %v1323_v59  ;;  %v1328_v29 = vld [vmem:[%s1667_s4 + $0x10] sm:$0xff]  }
  0xec   : > { %1218 = vmatprep.subr.bf16.mxu1 %v1324_v60 }
  0xed   : > { %v397_v52 = vmax.f32 %v381_v49, 0.0  ;;  %v403_v55 = vpack.c.bf16 %v399_v50, %v398_v53 }
  0xef   : > { %v402_v54 = vpack.c.bf16 %v397_v52, %v396_v51  ;;  %1219 = vmatpush3.bf16.msra.mxu1 %v1324_v60 }
  0xf0   : > { %1220 = vmatprep.subr.bf16.mxu1 %v1325_v61 }
  0xf1   : > { %1188 = vmatprep.mubr.bf16.mxu1 %v402_v54 }
  0xf2   : > { %1189 = vmatmul.mubr.bf16.gmra.mxu1 %v403_v55 }
  0xf3   : > { %1221 = vmatpush3.bf16.msra.mxu1 %v1325_v61 }
  0xf4   : > { %1222 = vmatprep.subr.bf16.mxu1 %v1326_v62 }
  0xf7   : > { %1223 = vmatpush3.bf16.msra.mxu1 %v1326_v62 }
  0xf8   : > { %1224 = vmatprep.subr.bf16.mxu1 %v1327_v63 }
  0xfb   : > { %1225 = vmatpush3.bf16.msra.mxu1 %v1327_v63 }
  0xfc   : > { %1226 = vmatprep.subr.bf16.mxu1 %v1328_v29 }
  0xff   : > { %1227 = vmatpush3.bf16.msra.mxu1 %v1328_v29 }
 0x100   : > { %1228 = vmatprep.subr.bf16.mxu1 %v1329_v30 }
 0x103   : > { %1229 = vmatpush3.bf16.msra.mxu1 %v1329_v30 }
 0x104   : > { %1230 = vmatprep.subr.bf16.mxu1 %v1330_v31 }
 0x107   : > { %1231 = vmatpush3.bf16.msra.mxu1 %v1330_v31 }
 0x1aa   : > { %v1186_v0 = vpop.f32.mrf.mxu1 }
 0x1ab   : > { %v516_v6 = vadd.f32 %v1186_v0, %v1061_v2 }
 0x1ac   : > { %v507_v1 = vpop.f32.mrf.mxu1 }
 0x1ad   : > { %v508_v4 = vadd.f32 %v1061_v2, %v507_v1  ;;  %v540_v13 = vmax.f32 %v516_v6, 0.0 }
 0x1ae   : > { %v1187_v3 = vpop.f32.mrf.mxu1 }
 0x1af   : > { %v519_v5 = vadd.f32 %v1187_v3, %v1061_v2  ;;  %v538_v11 = vmax.f32 %v508_v4, 0.0  ;;  %v1337_v3 = vld [vmem:[%s1668_s5 + $0x8] sm:$0xff]   ;;  %v1338_v4 = vld [vmem:[%s1668_s5] sm:$0xff]  }
 0x1b0   : > { %v510_v7 = vpop.f32.mrf.mxu1 }
 0x1b1   : > { %v511_v8 = vadd.f32 %v1061_v2, %v510_v7  ;;  %v541_v9 = vmax.f32 %v519_v5, 0.0 }
 0x1b2   : > { %v1190_v10 = vpop.f32.mrf.mxu1 }
 0x1b3   : > { %v539_v12 = vmax.f32 %v511_v8, 0.0  ;;  %v547_v16 = vpack.c.bf16 %v541_v9, %v540_v13  ;;  %v532_v20 = vadd.f32 %v1190_v10, %v1061_v2  ;;  %v1079_v8 = vld [vmem:[%s1669_s6 + $0x3] ss:$0 sm:$0xff] }
 0x1b4   : > { %v523_v14 = vpop.f32.mrf.mxu1 }
 0x1b5   : > { %v546_v15 = vpack.c.bf16 %v539_v12, %v538_v11  ;;  %v524_v18 = vadd.f32 %v1061_v2, %v523_v14  ;;  %v544_v26 = vmax.f32 %v532_v20, 0.0 }
 0x1b6   : > { %v1191_v17 = vpop.f32.mrf.mxu1 }
 0x1b7   : > { %v535_v19 = vadd.f32 %v1191_v17, %v1061_v2  ;;  %1208 = vmatprep.mubr.bf16.mxu0 %v546_v15  ;;  %v542_v24 = vmax.f32 %v524_v18, 0.0 }
 0x1b8   : > { %v526_v21 = vpop.f32.mrf.mxu1  ;;  %1209 = vmatmul.mubr.bf16.vlgmr.msra.gmra.mxu0 %v547_v16 }
 0x1b9   : > { %v527_v22 = vadd.f32 %v1061_v2, %v526_v21  ;;  %v545_v23 = vmax.f32 %v535_v19, 0.0  ;;  %1241 = vmatpush3.bf16.msra.mxu0 %v1331_v32  ;;  %v1336_v2 = vld [vmem:[%s1668_s5 + $0x10] sm:$0xff]  }
 0x1ba   : > { %1242 = vmatprep.subr.bf16.mxu0 %v1332_v33 }
 0x1bb   : > { %v543_v25 = vmax.f32 %v527_v22, 0.0  ;;  %v549_v28 = vpack.c.bf16 %v545_v23, %v544_v26 }
 0x1bd   : > { %v548_v27 = vpack.c.bf16 %v543_v25, %v542_v24  ;;  %1243 = vmatpush3.bf16.msra.mxu0 %v1332_v33 }
 0x1be   : > { %1244 = vmatprep.subr.bf16.mxu0 %v1333_v34 }
 0x1bf   : > { %1212 = vmatprep.mubr.bf16.mxu0 %v548_v27 }
 0x1c0   : > { %1213 = vmatmul.mubr.bf16.gmra.mxu0 %v549_v28 }
 0x1c1   : > { %1245 = vmatpush3.bf16.msra.mxu0 %v1333_v34 }
 0x1c2   : > { %1246 = vmatprep.subr.bf16.mxu0 %v1334_v35 }
 0x1c5   : > { %1247 = vmatpush3.bf16.msra.mxu0 %v1334_v35 }
 0x1c6   : > { %1248 = vmatprep.subr.bf16.mxu0 %v1335_v36 }
 0x1c9   : > { %1249 = vmatpush3.bf16.msra.mxu0 %v1335_v36 }
 0x1ca   : > { %1250 = vmatprep.subr.bf16.mxu0 %v1336_v2 }
 0x1cd   : > { %1251 = vmatpush3.bf16.msra.mxu0 %v1336_v2 }
 0x1ce   : > { %1252 = vmatprep.subr.bf16.mxu0 %v1337_v3 }
 0x1d1   : > { %1253 = vmatpush3.bf16.msra.mxu0 %v1337_v3 }
 0x1d2   : > { %1254 = vmatprep.subr.bf16.mxu0 %v1338_v4 }
 0x1d5   : > { %1255 = vmatpush3.bf16.msra.mxu0 %v1338_v4 }
 0x278   : > { %v1210_v37 = vpop.f32.mrf.mxu0 }
 0x279   : > { %v662_v43 = vadd.f32 %v1210_v37, %v1070_v39 }
 0x27a   : > { %v653_v38 = vpop.f32.mrf.mxu0 }
 0x27b   : > { %v654_v41 = vadd.f32 %v1070_v39, %v653_v38  ;;  %v686_v50 = vmax.f32 %v662_v43, 0.0 }
 0x27c   : > { %v1211_v40 = vpop.f32.mrf.mxu0 }
 0x27d   : > { %v665_v42 = vadd.f32 %v1211_v40, %v1070_v39  ;;  %v684_v48 = vmax.f32 %v654_v41, 0.0 }
 0x27e   : > { %v656_v44 = vpop.f32.mrf.mxu0 }
 0x27f   : > { %v657_v45 = vadd.f32 %v1070_v39, %v656_v44  ;;  %v687_v46 = vmax.f32 %v665_v42, 0.0 }
 0x280   : > { %v1214_v47 = vpop.f32.mrf.mxu0 }
 0x281   : > { %v685_v49 = vmax.f32 %v657_v45, 0.0  ;;  %v693_v53 = vpack.c.bf16 %v687_v46, %v686_v50  ;;  %v678_v57 = vadd.f32 %v1214_v47, %v1070_v39 }
 0x282   : > { %v669_v51 = vpop.f32.mrf.mxu0 }
 0x283   : > { %v692_v52 = vpack.c.bf16 %v685_v49, %v684_v48  ;;  %v670_v55 = vadd.f32 %v1070_v39, %v669_v51  ;;  %v690_v63 = vmax.f32 %v678_v57, 0.0 }
 0x284   : > { %v1215_v54 = vpop.f32.mrf.mxu0 }
 0x285   : > { %v681_v56 = vadd.f32 %v1215_v54, %v1070_v39  ;;  %1232 = vmatprep.mubr.bf16.mxu1 %v692_v52  ;;  %v688_v61 = vmax.f32 %v670_v55, 0.0 }
 0x286   : > { %v672_v58 = vpop.f32.mrf.mxu0  ;;  %1233 = vmatmul.mubr.bf16.vlgmr.msra.gmra.mxu1 %v693_v53 }
 0x287   : > { %v673_v59 = vadd.f32 %v1070_v39, %v672_v58  ;;  %v691_v60 = vmax.f32 %v681_v56, 0.0 }
 0x289   : > { %v689_v62 = vmax.f32 %v673_v59, 0.0  ;;  %v695_v1 = vpack.c.bf16 %v691_v60, %v690_v63 }
 0x28b   : > { %v694_v0 = vpack.c.bf16 %v689_v62, %v688_v61 }
 0x28d   : > { %1236 = vmatprep.mubr.bf16.mxu1 %v694_v0 }
 0x28e   : > { %1237 = vmatmul.mubr.bf16.gmra.mxu1 %v695_v1 }
 0x346   : > { %v1234_v5 = vpop.f32.mrf.mxu1 }
 0x347   : > { %v808_v13 = vadd.f32 %v1234_v5, %v1079_v8 }
 0x348   : > { %v799_v6 = vpop.f32.mrf.mxu1 }
 0x349   : > { %v800_v11 = vadd.f32 %v1079_v8, %v799_v6 }
 0x34a   : > { %v1235_v7 = vpop.f32.mrf.mxu1 }
 0x34b   : > { %v811_v9 = vadd.f32 %v1235_v7, %v1079_v8 }
 0x34c   : > { %v802_v10 = vpop.f32.mrf.mxu1 }
 0x34d   : > { %v803_v12 = vadd.f32 %v1079_v8, %v802_v10  ;;  %v831_v16 = vpack.c.bf16 %v811_v9, %v808_v13 }
 0x34e   : > { %v1238_v14 = vpop.f32.mrf.mxu1 }
 0x34f   : > { %v830_v15 = vpack.c.bf16 %v803_v12, %v800_v11  ;;  %v824_v23 = vadd.f32 %v1238_v14, %v1079_v8 }
 0x350   : > { %v815_v17 = vpop.f32.mrf.mxu1 }
 0x351   : > { %1256 = vmatprep.mubr.bf16.mxu0 %v830_v15  ;;  %v816_v21 = vadd.f32 %v1079_v8, %v815_v17 }
 0x352   : > { %v1239_v18 = vpop.f32.mrf.mxu1  ;;  %1257 = vmatmul.mubr.bf16.vlgmr.msra.gmra.mxu0 %v831_v16 }
 0x353   : > { %v827_v19 = vadd.f32 %v1239_v18, %v1079_v8 }
 0x354   : > { %v818_v20 = vpop.f32.mrf.mxu1 }
 0x355   : > { %v819_v22 = vadd.f32 %v1079_v8, %v818_v20  ;;  %v833_v25 = vpack.c.bf16 %v827_v19, %v824_v23 }
 0x357   : > { %v832_v24 = vpack.c.bf16 %v819_v22, %v816_v21 }
 0x359   : > { %1260 = vmatprep.mubr.bf16.mxu0 %v832_v24 }
 0x35a   : > { %1261 = vmatmul.mubr.bf16.gmra.mxu0 %v833_v25 }
 0x412   : > { %v1258_v26 = vpop.f32.mrf.mxu0 }
 0x413   : > { %965 = vst [vmem:[%s272_s9 + $0x10] sm:$0xff] %v1258_v26 }
 0x414   : > { %v932_v27 = vpop.f32.mrf.mxu0 }
 0x415   : > { %963 = vst [vmem:[%s272_s9] sm:$0xff] %v932_v27 }
 0x416   : > { %v1259_v28 = vpop.f32.mrf.mxu0 }
 0x417   : > { %966 = vst [vmem:[%s272_s9 + $0x18] sm:$0xff] %v1259_v28 }
 0x418   : > { %v935_v29 = vpop.f32.mrf.mxu0 }
 0x419   : > { %964 = vst [vmem:[%s272_s9 + $0x8] sm:$0xff] %v935_v29 }
 0x41a   : > { %v1262_v30 = vpop.f32.mrf.mxu0 }
 0x41b   : > { %969 = vst [vmem:[%s272_s9 + $0x30] sm:$0xff] %v1262_v30 }
 0x41c   : > { %v948_v31 = vpop.f32.mrf.mxu0 }
 0x41d   : > { %967 = vst [vmem:[%s272_s9 + $0x20] sm:$0xff] %v948_v31 }
 0x41e   : > { %v1263_v32 = vpop.f32.mrf.mxu0 }
 0x41f   : > { %970 = vst [vmem:[%s272_s9 + $0x38] sm:$0xff] %v1263_v32 }
 0x420   : > { %v951_v33 = vpop.f32.mrf.mxu0 }
 0x421   : > { %968 = vst [vmem:[%s272_s9 + $0x28] sm:$0xff] %v951_v33 }
 0x422   : > { %1352 = shalt.err (!%p1349_p3)
}
 0x423   : > { %s1353_s22 = scalar_lea.hbm %s1621_s17, 1024  ;;  %s1357_s8 = scalar_lea.hbm %s1670_s7, 4096 }
 0x424   : > { %p1354_p4 = scmp.ne.s32.totalorder %s1621_s17, %s1353_s22  ;;  %p1358_p9 = scmp.lt.s32.totalorder %s1621_s17, %s1670_s7 }
 0x425   : > { %p1359_p10 = scmp.lt.s32.totalorder %s1357_s8, %s1353_s22 }
 0x426   : > { %p1355_p7 = pnand %p1354_p4, %p1482_p5 }
 0x427   : > { %p1360_p11 = por %p1359_p10, %p1358_p9 }
 0x428   : > { %p1356_p8 = pneg %p1355_p7 }
 0x42a   : > { %p1361_p12 = pnand %p1360_p11, %p1356_p8 }
 0x42c   : > { %1364 = shalt.err (!%p1361_p12)
}
 0x42d   : > { %s1402_s15 = smov 128   ;;  %s1403_s16 = smov 8  }
 0x42e   : > { %1264 = dma.vmem_to_hbm [thread:$0]  (%p1482_p5), %s1616_s13, 1024, %s1621_s17, %s1623_s18, %s1402_s15, %s1402_s15, %s1403_s16  }
 0x42f PF: > { %p1270_p13 = scmp.ge.s32.totalorder %s1399_s27, 2  ;;  %s1000_s19 = sand.u32 1, %s1387_s24  }
 0x430   : > { %s1001_s28 = scalar_lea.sflag [#allocation3], %s1000_s19 }
 0x431   : > { %p1267_p0 = pnand %p1270_p13, %p1486_p6 }
 0x433   : > { %p1268_p1 = pneg %p1267_p0 }
 0x435   : > { %1382 = dma.done.wait (%p1268_p1), %s1001_s28, 1024  }
 0x436   : > { %1384 = vsyncadd (%p1268_p1), %s1001_s28, 4294966272  ;;  %p17_p2 = scmp.ge.s32.totalorder %s1469_s30, 6   ;;  %s1673_s24 = smov %s1391_s25 }
 0x437   : > { %s1674_s25 = smov %s1395_s26  ;;  %s1675_s26 = smov %s1480_s10 }
 0x438   : > { %s1676_s27 = smov %s1469_s30  ;;  %19 = sbr.rel (!%p17_p2) target bundleno = 3 (0x3), region = 83 }
 0x43d   :  { %1006 = vsyncpa [#allocation3], 1 }
 0x43e   :  { %1008 = vsyncpa [#allocation3 + $0x1], 1 }

</bundles_post_ra>
